<compile_context>
chip_gen: v6e
topology: v6e:2x2x1
jax: 0.10.0
libtpu: 0.0.40
codegen_flags: <defaults>
</compile_context>

<pallas_src>
import jax
import jax.numpy as jnp
from jax.experimental import pallas as pl
from jax.experimental.pallas import tpu as pltpu

INPUT_DIM = 1
OUTPUT_DIM = 1

_LANES = 128          # vreg lane width (fast axis)
_SUBLANES = 8         # f32 sublane count
_MAX_TILE_ROWS = 512  # (512, 128) f32 = 256 KiB per block; fits v7x VMEM with double-buffering


def _scale_bias_kernel(x_ref, w_ref, b_ref, o_ref):
    # x_ref / o_ref: (tile_rows, 128) f32 in VMEM.
    # w_ref / b_ref: (1, 1) f32 scalars in SMEM.
    # Pure VPU multiply-add; full unmasked lane-dense stores.
    o_ref[...] = x_ref[...] * w_ref[0, 0] + b_ref[0, 0]


def _round_up(v, m):
    return ((v + m - 1) // m) * m


@jax.jit
def linear_forward(x, weight, bias):
    """out = x @ weight.T + bias  (PyTorch nn.Linear(1, 1) semantics).

    x:      (B, 1)  float32
    weight: (1, 1)  float32
    bias:   (1,)    float32
    returns (B, 1)  float32
    """
    B, K = x.shape
    N, K2 = weight.shape
    assert K == 1 and N == 1 and K2 == 1, "kernel specialized for 1-in / 1-out linear"

    # Lane-dense layout: put batch elements on the 128-lane axis so every vreg
    # is fully utilized and stores are unmasked.
    flat = x.reshape(-1).astype(jnp.float32)             # (B,)
    rows = _round_up(pl.cdiv(B, _LANES), _SUBLANES)      # rows of the (rows, 128) slab
    if rows <= _MAX_TILE_ROWS:
        tile_rows = rows
    else:
        tile_rows = _MAX_TILE_ROWS
        rows = _round_up(rows, tile_rows)
    padded = rows * _LANES

    # Only the batch tail is padded (cheap); weight/bias pass through untouched
    # as scalars instead of being scattered into 128-wide padded buffers.
    x_slab = jnp.pad(flat, (0, padded - B)).reshape(rows, _LANES)
    w_s = weight.reshape(1, 1).astype(jnp.float32)
    b_s = bias.reshape(1, 1).astype(jnp.float32)

    grid = (rows // tile_rows,)
    out_slab = pl.pallas_call(
        _scale_bias_kernel,
        out_shape=jax.ShapeDtypeStruct((rows, _LANES), jnp.float32),
        grid=grid,
        in_specs=[
            pl.BlockSpec((tile_rows, _LANES), lambda i: (i, 0)),
            pl.BlockSpec(memory_space=pltpu.MemorySpace.SMEM),
            pl.BlockSpec(memory_space=pltpu.MemorySpace.SMEM),
        ],
        out_specs=pl.BlockSpec((tile_rows, _LANES), lambda i: (i, 0)),
        compiler_params=pltpu.CompilerParams(
            dimension_semantics=("parallel",),
        ),
    )(x_slab, w_s, b_s)

    return out_slab.reshape(-1)[:B].reshape(B, OUTPUT_DIM)


if __name__ == "__main__":
    key = jax.random.PRNGKey(0)
    kx, kw, kb = jax.random.split(key, 3)

    # Small example input: batch of 8 samples with 1 feature each.
    batch = 8
    x = jax.random.normal(kx, (batch, INPUT_DIM), dtype=jnp.float32)

    # Deterministic parameter init (PyTorch-style uniform(-1/sqrt(K), 1/sqrt(K))).
    bound = 1.0 / (INPUT_DIM ** 0.5)
    weight = jax.random.uniform(
        kw, (OUTPUT_DIM, INPUT_DIM), jnp.float32, minval=-bound, maxval=bound
    )
    bias = jax.random.uniform(
        kb, (OUTPUT_DIM,), jnp.float32, minval=-bound, maxval=bound
    )

    out = linear_forward(x, weight, bias)
    out = jax.block_until_ready(out)

    # Cross-check against plain JAX reference (nn.Linear semantics).
    ref = x @ weight.T + bias
    assert out.shape == (batch, OUTPUT_DIM)
    assert jnp.allclose(out, ref, atol=1e-5, rtol=1e-5)

    print("KERNEL_OK")
</pallas_src>

<mosaic_0001>
module attributes {stable_mosaic.version = 11 : i64} {
  func.func @_scale_bias_kernel(%arg0: i32, %arg1: memref<8x128xf32, #tpu.memory_space<vmem>>, %arg2: memref<1x1xf32, #tpu.memory_space<smem>>, %arg3: memref<1x1xf32, #tpu.memory_space<smem>>, %arg4: memref<8x128xf32, #tpu.memory_space<vmem>>) attributes {dimension_semantics = [#tpu.dimension_semantics<parallel>], iteration_bounds = array<i64: 1>, scalar_prefetch = 0 : i64, scratch_operands = 0 : i64, tpu.core_type = #tpu.core_type<tc>, window_params = [{transform_indices = @transform_0, window_bounds = array<i64: 8, 128>}, {transform_indices = @transform_1, window_bounds = array<i64: 1, 1>}, {transform_indices = @transform_2, window_bounds = array<i64: 1, 1>}, {transform_indices = @transform_3, window_bounds = array<i64: 8, 128>}]} {
    %c0 = arith.constant 0 : index
    %c0_0 = arith.constant 0 : index
    %0 = vector.load %arg1[%c0, %c0_0] : memref<8x128xf32, #tpu.memory_space<vmem>>, vector<8x128xf32>
    %c0_1 = arith.constant 0 : index
    %c0_2 = arith.constant 0 : index
    %1 = memref.load %arg2[%c0_1, %c0_2] : memref<1x1xf32, #tpu.memory_space<smem>>
    %2 = vector.broadcast %1 : f32 to vector<8x128xf32>
    %3 = arith.mulf %0, %2 : vector<8x128xf32>
    %c0_3 = arith.constant 0 : index
    %c0_4 = arith.constant 0 : index
    %4 = memref.load %arg3[%c0_3, %c0_4] : memref<1x1xf32, #tpu.memory_space<smem>>
    %5 = vector.broadcast %4 : f32 to vector<8x128xf32>
    %6 = arith.addf %3, %5 : vector<8x128xf32>
    %c0_5 = arith.constant 0 : index
    %c0_6 = arith.constant 0 : index
    %7 = vector.load %arg4[%c0_5, %c0_6] : memref<8x128xf32, #tpu.memory_space<vmem>>, vector<8x128xf32>
    tpu.vector_store %arg4[%c0_5, %c0_6], %6 {strides = array<i32>} : memref<8x128xf32, #tpu.memory_space<vmem>>, vector<8x128xf32>,
    return
  }
  func.func @transform_0(%arg0: i32) -> (i32, i32) {
    %c0_i32 = arith.constant 0 : i32
    %c0_i32_0 = arith.constant 0 : i32
    return %arg0, %c0_i32 : i32, i32
  }
  func.func @transform_1(%arg0: i32) -> (i32, i32) {
    %c0_i32 = arith.constant 0 : i32
    %c0_i32_0 = arith.constant 0 : i32
    %c0_i32_1 = arith.constant 0 : i32
    return %c0_i32, %c0_i32_0 : i32, i32
  }
  func.func @transform_2(%arg0: i32) -> (i32, i32) {
    %c0_i32 = arith.constant 0 : i32
    %c0_i32_0 = arith.constant 0 : i32
    %c0_i32_1 = arith.constant 0 : i32
    return %c0_i32, %c0_i32_0 : i32, i32
  }
  func.func @transform_3(%arg0: i32) -> (i32, i32) {
    %c0_i32 = arith.constant 0 : i32
    %c0_i32_0 = arith.constant 0 : i32
    return %arg0, %c0_i32 : i32, i32
  }
}

</mosaic_0001>

<bundles_post_ra>
// kernel: linear_forward.1
= control target key start
LH: loop header
LB: loop body
LE: loop exit
PB: predicated region body
PF: predicated region fallthrough
CT: control target
= control target key end

     0   :  { %s60_s0 = inlined_call_operand.vmem [shape: f32[8,128], index: 0, kind: input, shape index: {}]   ;;  %s61_s1 = inlined_call_operand.<no memory space> [shape: f32[1,1], index: 1, kind: input, shape index: {}]   ;;  %s62_s2 = inlined_call_operand.<no memory space> [shape: f32[1,1], index: 2, kind: input, shape index: {}]   ;;  %s63_s3 = inlined_call_operand.vmem [shape: f32[8,128], index: 3, kind: output, shape index: {}]  }
   0x1   :  { %v16_v0 = vld [vmem:[%s60_s0] sm:$0xff]  ;;  %v18_v1 = vstv %s61_s1  ;;  %v21_v2 = vstv %s62_s2 }
   0x2   :  { %v19_v3 = vmul.f32 %v18_v1, %v16_v0 }
   0x4   :  { %v22_v4 = vadd.f32 %v21_v2, %v19_v3 }
   0x6   :  { %23 = vst [vmem:[%s63_s3] sm:$0xff] %v22_v4 }

</bundles_post_ra>
